<compile_context>
chip_gen: v6e
topology: v6e:2x2x1
jax: 0.10.0
libtpu: 0.0.40
codegen_flags: <defaults>
</compile_context>

<pallas_src>
import functools

import jax
import jax.numpy as jnp
from jax.experimental import pallas as pl
from jax.experimental.pallas import tpu as pltpu


def _round_up(x: int, m: int) -> int:
    return (x + m - 1) // m * m


def _mlp_kernel(x_ref, w1_ref, b1_ref, w2_ref, b2_ref, w3_ref, b3_ref, o_ref):
    # x tile arrives as f32 (tb, 784); cast to bf16 for the MXU in-kernel.
    x = x_ref[...].astype(jnp.bfloat16)
    # Layer 1: (tb, 784)bf16 @ (784, Hp)bf16 -> f32 acc, +bias, relu
    h1 = jnp.dot(x, w1_ref[...], preferred_element_type=jnp.float32)
    h1 = jnp.maximum(h1 + b1_ref[...], 0.0).astype(jnp.bfloat16)
    # Layer 2: (tb, Hp) @ (Hp, Hp)
    h2 = jnp.dot(h1, w2_ref[...], preferred_element_type=jnp.float32)
    h2 = jnp.maximum(h2 + b2_ref[...], 0.0).astype(jnp.bfloat16)
    # Layer 3 (logits, no activation): (tb, Hp) @ (Hp, 10)
    out = jnp.dot(h2, w3_ref[...], preferred_element_type=jnp.float32)
    o_ref[...] = (out + b3_ref[...]).astype(o_ref.dtype)


def prepare_params(w1, b1, w2, b2, w3, b3):
    """One-time pad (hidden dim -> multiple of 128) + bf16 cast of the weights.

    Zero padding is exact: padded hidden cols see bias 0 and relu(0) = 0, and
    padded W3 rows are 0, so logits are unchanged.  Call once per param update.
    """
    H = w1.shape[1]
    Hp = _round_up(H, 128)
    w1p = jnp.pad(w1, ((0, 0), (0, Hp - H))).astype(jnp.bfloat16)       # (784, Hp)
    b1p = jnp.pad(b1, ((0, 0), (0, Hp - H))).astype(jnp.float32)        # (1, Hp)
    w2p = jnp.pad(w2, ((0, Hp - H), (0, Hp - H))).astype(jnp.bfloat16)  # (Hp, Hp)
    b2p = jnp.pad(b2, ((0, 0), (0, Hp - H))).astype(jnp.float32)        # (1, Hp)
    w3p = jnp.pad(w3, ((0, Hp - H), (0, 0))).astype(jnp.bfloat16)       # (Hp, 10)
    b3p = b3.astype(jnp.float32)                                        # (1, 10)
    return w1p, b1p, w2p, b2p, w3p, b3p


@functools.partial(jax.jit, static_argnames=("tile_b", "core_parallel"))
def fashion_classifier_forward(x, w1p, b1p, w2p, b2p, w3p, b3p, *,
                               tile_b=1024, core_parallel=False):
    """x: (B, 784) f32.  Padded/bf16 params from prepare_params().  Returns (B, 10) f32.

    Set core_parallel=True on v7x to split the batch grid across both TensorCores.
    """
    B, F = x.shape
    C = w3p.shape[1]  # 10 classes

    # Batch tile: multiple of 16 (bf16 sublane packing), capped by the batch.
    tb = min(_round_up(tile_b, 16), _round_up(B, 16))
    grid = (pl.cdiv(B, tb),)  # masked partial last block handles ragged B

    # Weights/biases: constant index_map -> VMEM-resident across all grid steps.
    resident = lambda a: pl.BlockSpec(a.shape, lambda i: (0, 0))

    batch_sem = pltpu.CORE_PARALLEL if core_parallel else "parallel"

    out = pl.pallas_call(
        _mlp_kernel,
        out_shape=jax.ShapeDtypeStruct((B, C), jnp.float32),
        grid=grid,
        in_specs=[
            pl.BlockSpec((tb, F), lambda i: (i, 0)),   # x streams per batch tile
            resident(w1p), resident(b1p),
            resident(w2p), resident(b2p),
            resident(w3p), resident(b3p),
        ],
        out_specs=pl.BlockSpec((tb, C), lambda i: (i, 0)),
        compiler_params=pltpu.CompilerParams(
            dimension_semantics=(batch_sem,),
            vmem_limit_bytes=32 << 20,
        ),
    )(x, w1p, b1p, w2p, b2p, w3p, b3p)

    return out


def init_params(key, neurons):
    """Kaiming-uniform (relu gain) weights, PyTorch-style bias init, (in, out) layout."""
    def kaiming_uniform(k, fan_in, fan_out):
        bound = jnp.sqrt(2.0) * jnp.sqrt(3.0 / fan_in)
        return jax.random.uniform(k, (fan_in, fan_out), jnp.float32, -bound, bound)

    def linear_bias(k, fan_in, fan_out):
        bound = 1.0 / jnp.sqrt(fan_in)
        return jax.random.uniform(k, (1, fan_out), jnp.float32, -bound, bound)

    ks = jax.random.split(key, 6)
    w1 = kaiming_uniform(ks[0], 784, neurons)
    b1 = linear_bias(ks[1], 784, neurons)
    w2 = kaiming_uniform(ks[2], neurons, neurons)
    b2 = linear_bias(ks[3], neurons, neurons)
    w3 = kaiming_uniform(ks[4], neurons, 10)
    b3 = linear_bias(ks[5], neurons, 10)
    return w1, b1, w2, b2, w3, b3


def _reference(x, w1, b1, w2, b2, w3, b3):
    """Same math with bf16 operands + f32 accumulation (matches kernel numerics)."""
    xb = x.astype(jnp.bfloat16)
    h = jnp.dot(xb, w1.astype(jnp.bfloat16), preferred_element_type=jnp.float32) + b1
    h = jnp.maximum(h, 0.0).astype(jnp.bfloat16)
    h = jnp.dot(h, w2.astype(jnp.bfloat16), preferred_element_type=jnp.float32) + b2
    h = jnp.maximum(h, 0.0).astype(jnp.bfloat16)
    return jnp.dot(h, w3.astype(jnp.bfloat16), preferred_element_type=jnp.float32) + b3


if __name__ == "__main__":
    key = jax.random.PRNGKey(0)
    k_x, k_x2, k_x3, k_p = jax.random.split(key, 4)

    neurons = 32
    params = init_params(k_p, neurons)
    padded = prepare_params(*params)   # hoisted one-time pad + bf16 cast

    # Case 1: small batch (multiple of 8)
    x = jax.random.normal(k_x, (8, 784), dtype=jnp.float32)
    out = jax.block_until_ready(fashion_classifier_forward(x, *padded))
    ref = _reference(x, *params)
    assert out.shape == (8, 10), out.shape
    assert jnp.allclose(out, ref, atol=2e-2, rtol=2e-2), "mismatch vs reference (batch=8)"

    # Case 2: ragged batch smaller than a tile (masked partial block)
    x2 = jax.random.normal(k_x2, (3, 784), dtype=jnp.float32)
    out2 = jax.block_until_ready(fashion_classifier_forward(x2, *padded))
    ref2 = _reference(x2, *params)
    assert out2.shape == (3, 10), out2.shape
    assert jnp.allclose(out2, ref2, atol=2e-2, rtol=2e-2), "mismatch vs reference (batch=3)"

    # Case 3: multi-step grid with a partial final block (tile_b forced small)
    x3 = jax.random.normal(k_x3, (40, 784), dtype=jnp.float32)
    out3 = jax.block_until_ready(fashion_classifier_forward(x3, *padded, tile_b=16))
    ref3 = _reference(x3, *params)
    assert out3.shape == (40, 10), out3.shape
    assert jnp.allclose(out3, ref3, atol=2e-2, rtol=2e-2), "mismatch vs reference (batch=40)"

    print("KERNEL_OK")
</pallas_src>

<mosaic_0001>
module attributes {stable_mosaic.version = 11 : i64} {
  func.func @_mlp_kernel(%arg0: i32, %arg1: memref<16x784xf32, #tpu.memory_space<vmem>>, %arg2: memref<784x128xbf16, #tpu.memory_space<vmem>>, %arg3: memref<1x128xf32, #tpu.memory_space<vmem>>, %arg4: memref<128x128xbf16, #tpu.memory_space<vmem>>, %arg5: memref<1x128xf32, #tpu.memory_space<vmem>>, %arg6: memref<128x10xbf16, #tpu.memory_space<vmem>>, %arg7: memref<1x10xf32, #tpu.memory_space<vmem>>, %arg8: memref<16x10xf32, #tpu.memory_space<vmem>>) attributes {dimension_semantics = [#tpu.dimension_semantics<parallel>], iteration_bounds = array<i64: 1>, scalar_prefetch = 0 : i64, scratch_operands = 0 : i64, tpu.core_type = #tpu.core_type<tc>, window_params = [{transform_indices = @transform_0, window_bounds = array<i64: 16, 784>}, {pipeline_mode = #tpu.pipeline_mode<synchronous>, transform_indices = @transform_1, window_bounds = array<i64: 784, 128>}, {pipeline_mode = #tpu.pipeline_mode<synchronous>, transform_indices = @transform_2, window_bounds = array<i64: 1, 128>}, {pipeline_mode = #tpu.pipeline_mode<synchronous>, transform_indices = @transform_3, window_bounds = array<i64: 128, 128>}, {pipeline_mode = #tpu.pipeline_mode<synchronous>, transform_indices = @transform_4, window_bounds = array<i64: 1, 128>}, {pipeline_mode = #tpu.pipeline_mode<synchronous>, transform_indices = @transform_5, window_bounds = array<i64: 128, 10>}, {pipeline_mode = #tpu.pipeline_mode<synchronous>, transform_indices = @transform_6, window_bounds = array<i64: 1, 10>}, {transform_indices = @transform_7, window_bounds = array<i64: 16, 10>}]} {
    %c0 = arith.constant 0 : index
    %c0_0 = arith.constant 0 : index
    %0 = vector.load %arg1[%c0, %c0_0] : memref<16x784xf32, #tpu.memory_space<vmem>>, vector<16x784xf32>
    %1 = arith.truncf %0 : vector<16x784xf32> to vector<16x784xbf16>
    %c0_1 = arith.constant 0 : index
    %c0_2 = arith.constant 0 : index
    %2 = vector.load %arg2[%c0_1, %c0_2] : memref<784x128xbf16, #tpu.memory_space<vmem>>, vector<784x128xbf16>
    %cst = arith.constant dense<0.000000e+00> : vector<16x128xf32>
    %3 = tpu.matmul %1, %2, %cst {dimension_numbers = #tpu.dot_dimension_numbers<[1], [0], [0], [1], [0, 0, 1, 1], [], []>} : vector<16x784xbf16>, vector<784x128xbf16>, vector<16x128xf32> -> vector<16x128xf32>
    %c0_3 = arith.constant 0 : index
    %c0_4 = arith.constant 0 : index
    %4 = vector.load %arg3[%c0_3, %c0_4] : memref<1x128xf32, #tpu.memory_space<vmem>>, vector<1x128xf32>
    %5 = vector.broadcast %4 : vector<1x128xf32> to vector<16x128xf32>
    %6 = arith.addf %3, %5 : vector<16x128xf32>
    %cst_5 = arith.constant 0.000000e+00 : f32
    %7 = vector.broadcast %cst_5 : f32 to vector<16x128xf32>
    %8 = arith.maximumf %6, %7 : vector<16x128xf32>
    %9 = arith.truncf %8 : vector<16x128xf32> to vector<16x128xbf16>
    %c0_6 = arith.constant 0 : index
    %c0_7 = arith.constant 0 : index
    %10 = vector.load %arg4[%c0_6, %c0_7] : memref<128x128xbf16, #tpu.memory_space<vmem>>, vector<128x128xbf16>
    %cst_8 = arith.constant dense<0.000000e+00> : vector<16x128xf32>
    %11 = tpu.matmul %9, %10, %cst_8 {dimension_numbers = #tpu.dot_dimension_numbers<[1], [0], [0], [1], [0, 0, 1, 1], [], []>} : vector<16x128xbf16>, vector<128x128xbf16>, vector<16x128xf32> -> vector<16x128xf32>
    %c0_9 = arith.constant 0 : index
    %c0_10 = arith.constant 0 : index
    %12 = vector.load %arg5[%c0_9, %c0_10] : memref<1x128xf32, #tpu.memory_space<vmem>>, vector<1x128xf32>
    %13 = vector.broadcast %12 : vector<1x128xf32> to vector<16x128xf32>
    %14 = arith.addf %11, %13 : vector<16x128xf32>
    %cst_11 = arith.constant 0.000000e+00 : f32
    %15 = vector.broadcast %cst_11 : f32 to vector<16x128xf32>
    %16 = arith.maximumf %14, %15 : vector<16x128xf32>
    %17 = arith.truncf %16 : vector<16x128xf32> to vector<16x128xbf16>
    %c0_12 = arith.constant 0 : index
    %c0_13 = arith.constant 0 : index
    %18 = vector.load %arg6[%c0_12, %c0_13] : memref<128x10xbf16, #tpu.memory_space<vmem>>, vector<128x10xbf16>
    %cst_14 = arith.constant dense<0.000000e+00> : vector<16x10xf32>
    %19 = tpu.matmul %17, %18, %cst_14 {dimension_numbers = #tpu.dot_dimension_numbers<[1], [0], [0], [1], [0, 0, 1, 1], [], []>} : vector<16x128xbf16>, vector<128x10xbf16>, vector<16x10xf32> -> vector<16x10xf32>
    %c0_15 = arith.constant 0 : index
    %c0_16 = arith.constant 0 : index
    %20 = vector.load %arg7[%c0_15, %c0_16] : memref<1x10xf32, #tpu.memory_space<vmem>>, vector<1x10xf32>
    %21 = vector.broadcast %20 : vector<1x10xf32> to vector<16x10xf32>
    %22 = arith.addf %19, %21 : vector<16x10xf32>
    %c0_17 = arith.constant 0 : index
    %c0_18 = arith.constant 0 : index
    %23 = vector.load %arg8[%c0_17, %c0_18] : memref<16x10xf32, #tpu.memory_space<vmem>>, vector<16x10xf32>
    tpu.vector_store %arg8[%c0_17, %c0_18], %22 {strides = array<i32>} : memref<16x10xf32, #tpu.memory_space<vmem>>, vector<16x10xf32>,
    return
  }
  func.func @transform_0(%arg0: i32) -> (i32, i32) {
    %c0_i32 = arith.constant 0 : i32
    %c0_i32_0 = arith.constant 0 : i32
    return %arg0, %c0_i32 : i32, i32
  }
  func.func @transform_1(%arg0: i32) -> (i32, i32) {
    %c0_i32 = arith.constant 0 : i32
    %c0_i32_0 = arith.constant 0 : i32
    %c0_i32_1 = arith.constant 0 : i32
    return %c0_i32, %c0_i32_0 : i32, i32
  }
  func.func @transform_2(%arg0: i32) -> (i32, i32) {
    %c0_i32 = arith.constant 0 : i32
    %c0_i32_0 = arith.constant 0 : i32
    %c0_i32_1 = arith.constant 0 : i32
    return %c0_i32, %c0_i32_0 : i32, i32
  }
  func.func @transform_3(%arg0: i32) -> (i32, i32) {
    %c0_i32 = arith.constant 0 : i32
    %c0_i32_0 = arith.constant 0 : i32
    %c0_i32_1 = arith.constant 0 : i32
    return %c0_i32, %c0_i32_0 : i32, i32
  }
  func.func @transform_4(%arg0: i32) -> (i32, i32) {
    %c0_i32 = arith.constant 0 : i32
    %c0_i32_0 = arith.constant 0 : i32
    %c0_i32_1 = arith.constant 0 : i32
    return %c0_i32, %c0_i32_0 : i32, i32
  }
  func.func @transform_5(%arg0: i32) -> (i32, i32) {
    %c0_i32 = arith.constant 0 : i32
    %c0_i32_0 = arith.constant 0 : i32
    %c0_i32_1 = arith.constant 0 : i32
    return %c0_i32, %c0_i32_0 : i32, i32
  }
  func.func @transform_6(%arg0: i32) -> (i32, i32) {
    %c0_i32 = arith.constant 0 : i32
    %c0_i32_0 = arith.constant 0 : i32
    %c0_i32_1 = arith.constant 0 : i32
    return %c0_i32, %c0_i32_0 : i32, i32
  }
  func.func @transform_7(%arg0: i32) -> (i32, i32) {
    %c0_i32 = arith.constant 0 : i32
    %c0_i32_0 = arith.constant 0 : i32
    return %arg0, %c0_i32 : i32, i32
  }
}

</mosaic_0001>

<bundles_post_ra>
// kernel: fashion_classifier_forward.1
= control target key start
LH: loop header
LB: loop body
LE: loop exit
PB: predicated region body
PF: predicated region fallthrough
CT: control target
= control target key end

     0   :  { %12 = vsyncpa [#allocation3], 0  ;;  %s1378_s0 = inlined_call_operand.hbm [shape: f32[8,784], index: 0, kind: input, shape index: {}]   ;;  %s1379_s1 = inlined_call_operand.hbm [shape: bf16[784,128], index: 1, kind: input, shape index: {}]   ;;  %s1380_s2 = inlined_call_operand.vmem [shape: f32[1,128], index: 2, kind: input, shape index: {}]   ;;  %s1381_s3 = inlined_call_operand.vmem [shape: bf16[128,128], index: 3, kind: input, shape index: {}]   ;;  %s1382_s4 = inlined_call_operand.vmem [shape: f32[1,128], index: 4, kind: input, shape index: {}]   ;;  %s1383_s5 = inlined_call_operand.vmem [shape: bf16[128,10], index: 5, kind: input, shape index: {}]   ;;  %s1384_s6 = inlined_call_operand.vmem [shape: f32[1,10], index: 6, kind: input, shape index: {}]   ;;  %s1385_s7 = inlined_call_operand.hbm [shape: f32[8,10], index: 7, kind: output, shape index: {}]  }
   0x1   :  { %13 = vsyncpa [#allocation6], 0 }
   0x2   :  { %14 = vsyncpa [#allocation4], 0 }
   0x3   :  { %19 = vsyncadd [#allocation3], 896  ;;  %s1238_s24 = smov [#allocation2]  }
   0x4   :  { %s20_s25 = sshll.u32 %s1238_s24, 4  ;;  %s21_s25 = int_to_ptr.vmem [resolvable:$true] %s20_s25 }
   0x5   :  { %s1180_s26 = scalar_lea.vmem %s21_s25, 896  ;;  %s1184_s27 = scalar_lea.vmem %s21_s25, 1792 }
   0x6   :  { %p1181_p0 = scmp.ne.s32.totalorder %s21_s25, %s1180_s26  ;;  %p1185_p1 = scmp.lt.s32.totalorder %s21_s25, %s21_s25 }
   0x7   :  { %p1186_p2 = scmp.lt.s32.totalorder %s1184_s27, %s1180_s26 }
   0x9   :  { %p1187_p3 = por %p1186_p2, %p1185_p1 }
   0xb   :  { %p1188_p4 = pnand %p1187_p3, %p1181_p0 }
   0xd   :  { %1191 = shalt.err (!%p1188_p4)
}
   0xe   :  { %s1239_s28 = smov 896   ;;  %s1240_s29 = smov 56  }
   0xf   :  { %26 = dma.hbm_to_vmem [thread:$0]  %s1378_s0, 896, %s21_s25, [#allocation3], %s1239_s28, %s1239_s28, %s1240_s29  }
  0x10   :  { %s1241_s9 = smov [#allocation5]  }
  0x11   :  { %s32_s10 = sshll.u32 %s1241_s9, 4  ;;  %s33_s10 = int_to_ptr.vmem [resolvable:$true] %s32_s10 }
  0x12   :  { %s1200_s11 = scalar_lea.vmem %s33_s10, 6272  ;;  %p1205_p6 = scmp.lt.s32.totalorder %s33_s10, %s33_s10 }
  0x13   :  { %p1201_p5 = scmp.ne.s32.totalorder %s33_s10, %s1200_s11  ;;  %p1206_p7 = scmp.lt.s32.totalorder %s1200_s11, %s1200_s11 }
  0x15   :  { %p1207_p8 = por %p1206_p7, %p1205_p6 }
  0x17   :  { %p1208_p9 = pnand %p1207_p8, %p1201_p5 }
  0x19   :  { %1211 = shalt.err (!%p1208_p9)
}
  0x1a   :  { %s1242_s12 = smov 64   ;;  %s1243_s13 = smov 4  }
  0x1b   :  { %38 = dma.hbm_to_vmem [thread:$0]  %s1379_s1, 6272, %s33_s10, [#allocation6], %s1242_s12, %s1242_s12, %s1243_s13  }
  0x1c   :  { %1232 = dma.done.wait [#allocation3], 1792  }
  0x1d   :  { %1233 = vsyncadd [#allocation3], 4294965504 }
  0x1e   :  { %1234 = dma.done.wait [#allocation6], 6272  }
  0x1f   :  { %1235 = vsyncadd [#allocation6], 4294961024  ;;  %v1107_v0 = vld [vmem:[#allocation5 + $0x78] sm:$0xff]   ;;  %v1111_v4 = vld [vmem:[#allocation5 + $0x70] sm:$0xff]   ;;  %v1244_v43 = vmov 0.0   ;;  %vm1245_vm0 = vmmov 0  }
  0x20   :  { %v1108_v1 = vld [vmem:[#allocation5 + $0x38] sm:$0xff]   ;;  %964 = vmatprep.subr.bf16.mxu0 %v1107_v0  ;;  %v1112_v5 = vld [vmem:[#allocation5 + $0x30] sm:$0xff]   ;;  %v1115_v8 = vld [vmem:[#allocation5 + $0x68] sm:$0xff]   ;;  %vm476_vm1 = vcmask 130048   ;;  %vm874_vm2 = vcmask 80896  }
  0x21   :  { %v1109_v2 = vld [vmem:[#allocation5 + $0xf8] sm:$0xff]   ;;  %965 = vmatpush3.bf16.msra.mxu0 %v1108_v1  ;;  %v1113_v6 = vld [vmem:[#allocation5 + $0xf0] sm:$0xff]   ;;  %v1116_v9 = vld [vmem:[#allocation5 + $0x28] sm:$0xff]  }
  0x22   :  { %v1110_v3 = vld [vmem:[#allocation5 + $0xb8] sm:$0xff]   ;;  %986 = vmatprep.subr.bf16.mxu1 %v1109_v2  ;;  %966 = vmatprep.subr.bf16.mxu0 %v1111_v4  ;;  %v1114_v7 = vld [vmem:[#allocation5 + $0xb0] sm:$0xff]   ;;  %v1117_v10 = vld [vmem:[#allocation5 + $0xe8] sm:$0xff]  }
  0x23   :  { %987 = vmatpush3.bf16.msra.mxu1 %v1110_v3  ;;  %v1118_v11 = vld [vmem:[#allocation5 + $0xa8] sm:$0xff]   ;;  %v1119_v12 = vld [vmem:[#allocation5 + $0x60] sm:$0xff]   ;;  %v1123_v16 = vld [vmem:[#allocation5 + $0x58] sm:$0xff]  }
  0x24   :  { %988 = vmatprep.subr.bf16.mxu1 %v1113_v6  ;;  %v1120_v13 = vld [vmem:[#allocation5 + $0x20] sm:$0xff]   ;;  %v1124_v17 = vld [vmem:[#allocation5 + $0x18] sm:$0xff]   ;;  %v1127_v20 = vld [vmem:[#allocation5 + $0x50] sm:$0xff]  }
  0x25   :  { %967 = vmatpush3.bf16.msra.mxu0 %v1112_v5  ;;  %v1121_v14 = vld [vmem:[#allocation5 + $0xe0] sm:$0xff]   ;;  %v1125_v18 = vld [vmem:[#allocation5 + $0xd8] sm:$0xff]   ;;  %v1128_v21 = vld [vmem:[#allocation5 + $0x10] sm:$0xff]  }
  0x26   :  { %968 = vmatprep.subr.bf16.mxu0 %v1115_v8  ;;  %v1122_v15 = vld [vmem:[#allocation5 + $0xa0] sm:$0xff]   ;;  %v1126_v19 = vld [vmem:[#allocation5 + $0x98] sm:$0xff]   ;;  %v1129_v22 = vld [vmem:[#allocation5 + $0xd0] sm:$0xff]  }
  0x27   :  { %989 = vmatpush3.bf16.msra.mxu1 %v1114_v7  ;;  %v1130_v23 = vld [vmem:[#allocation5 + $0x90] sm:$0xff]   ;;  %v1131_v24 = vld [vmem:[#allocation5 + $0x48] sm:$0xff]   ;;  %v1135_v28 = vld [vmem:[#allocation5 + $0x40] sm:$0xff]  }
  0x28   :  { %990 = vmatprep.subr.bf16.mxu1 %v1117_v10  ;;  %v1132_v25 = vld [vmem:[#allocation5 + $0x8] sm:$0xff]   ;;  %v1136_v29 = vld [vmem:[#allocation5] sm:$0xff]   ;;  %v57_v31 = vld [vmem:[#allocation2 + $0x8] sm:$0xff] }
  0x29   :  { %969 = vmatpush3.bf16.msra.mxu0 %v1116_v9  ;;  %v1133_v26 = vld [vmem:[#allocation5 + $0xc8] sm:$0xff]   ;;  %v1137_v30 = vld [vmem:[#allocation5 + $0xc0] sm:$0xff]   ;;  %v64_v32 = vld [vmem:[#allocation2 + $0x40] sm:$0xff] }
  0x2a   :  { %970 = vmatprep.subr.bf16.mxu0 %v1119_v12  ;;  %v1134_v27 = vld [vmem:[#allocation5 + $0x88] sm:$0xff]   ;;  %v71_v33 = vpack.c.bf16 %v64_v32, %v57_v31  ;;  %v1138_v34 = vld [vmem:[#allocation5 + $0x80] sm:$0xff]   ;;  %v56_v35 = vld [vmem:[#allocation2] sm:$0xff] }
  0x2b   :  { %991 = vmatpush3.bf16.msra.mxu1 %v1118_v11  ;;  %v63_v36 = vld [vmem:[#allocation2 + $0x38] sm:$0xff]  ;;  %v1139_v38 = vld [vmem:[#allocation5 + $0x178] sm:$0xff]   ;;  %v66_v40 = vld [vmem:[#allocation2 + $0x50] sm:$0xff] }
  0x2c   :  { %992 = vmatprep.subr.bf16.mxu1 %v1121_v14  ;;  %512 = vmatprep.mubr.bf16.mxu0 %v71_v33  ;;  %v70_v37 = vpack.c.bf16 %v63_v36, %v56_v35  ;;  %v59_v39 = vld [vmem:[#allocation2 + $0x18] sm:$0xff]  ;;  %v1140_v42 = vld [vmem:[#allocation5 + $0x138] sm:$0xff]   ;;  %v58_v44 = vld [vmem:[#allocation2 + $0x10] sm:$0xff] }
  0x2d   :  { %971 = vmatpush3.bf16.msra.mxu0 %v1120_v13  ;;  %v73_v41 = vpack.c.bf16 %v66_v40, %v59_v39  ;;  %v65_v45 = vld [vmem:[#allocation2 + $0x48] sm:$0xff]  ;;  %v1141_v47 = vld [vmem:[#allocation5 + $0x170] sm:$0xff]   ;;  %v1143_v49 = vld [vmem:[#allocation5 + $0x168] sm:$0xff]  }
  0x2e   :  { %972 = vmatprep.subr.bf16.mxu0 %v1123_v16  ;;  %v72_v46 = vpack.c.bf16 %v65_v45, %v58_v44  ;;  %v1142_v48 = vld [vmem:[#allocation5 + $0x130] sm:$0xff]   ;;  %v1144_v50 = vld [vmem:[#allocation5 + $0x128] sm:$0xff]   ;;  %v1145_v51 = vld [vmem:[#allocation5 + $0x160] sm:$0xff]  }
  0x2f   :  { %993 = vmatpush3.bf16.msra.mxu1 %v1122_v15  ;;  %553 = vmatprep.mubr.bf16.mxu1 %v73_v41  ;;  %v1146_v52 = vld [vmem:[#allocation5 + $0x120] sm:$0xff]   ;;  %v1147_v53 = vld [vmem:[#allocation5 + $0x158] sm:$0xff]   ;;  %v1149_v55 = vld [vmem:[#allocation5 + $0x150] sm:$0xff]  }
  0x30   :  { %994 = vmatprep.subr.bf16.mxu1 %v1125_v18  ;;  %v1148_v54 = vld [vmem:[#allocation5 + $0x118] sm:$0xff]   ;;  %v1155_v56 = vld [vmem:[#allocation5 + $0x180] sm:$0xff]   ;;  %v1150_v58 = vld [vmem:[#allocation5 + $0x110] sm:$0xff]  }
  0x31   :  { %973 = vmatpush3.bf16.msra.mxu0 %v1124_v17  ;;  %v61_v57 = vld [vmem:[#allocation2 + $0x28] sm:$0xff]  ;;  %v1151_v59 = vld [vmem:[#allocation5 + $0x148] sm:$0xff]   ;;  %v68_v60 = vld [vmem:[#allocation2 + $0x60] sm:$0xff] }
  0x32   :  { %974 = vmatprep.subr.bf16.mxu0 %v1127_v20  ;;  %v75_v61 = vpack.c.bf16 %v68_v60, %v61_v57  ;;  %v62_v62 = vld [vmem:[#allocation2 + $0x30] sm:$0xff]  ;;  %v69_v63 = vld [vmem:[#allocation2 + $0x68] sm:$0xff]  ;;  %v1152_v1 = vld [vmem:[#allocation5 + $0x108] sm:$0xff]  }
  0x33   :  { %995 = vmatpush3.bf16.msra.mxu1 %v1126_v19  ;;  %v76_v0 = vpack.c.bf16 %v69_v63, %v62_v62  ;;  %v1153_v2 = vld [vmem:[#allocation5 + $0x140] sm:$0xff]   ;;  %v60_v4 = vld [vmem:[#allocation2 + $0x20] sm:$0xff]  ;;  %v67_v5 = vld [vmem:[#allocation2 + $0x58] sm:$0xff] }
  0x34   :  { %996 = vmatprep.subr.bf16.mxu1 %v1129_v22  ;;  %v1154_v3 = vld [vmem:[#allocation5 + $0x100] sm:$0xff]   ;;  %v74_v6 = vpack.c.bf16 %v67_v5, %v60_v4  ;;  %v1156_v7 = vld [vmem:[%s1381_s3 + $0x38] sm:$0xff]   ;;  %v1158_v9 = vld [vmem:[%s1381_s3 + $0x28] sm:$0xff]  }
  0x35   :  { %975 = vmatpush3.bf16.msra.mxu0 %v1128_v21  ;;  %v1157_v8 = vld [vmem:[%s1381_s3 + $0x30] sm:$0xff]   ;;  %v1159_v10 = vld [vmem:[%s1381_s3 + $0x20] sm:$0xff]   ;;  %v1160_v11 = vld [vmem:[%s1381_s3 + $0x18] sm:$0xff]  }
  0x36   :  { %976 = vmatprep.subr.bf16.mxu0 %v1131_v24  ;;  %v1161_v12 = vld [vmem:[%s1381_s3 + $0x10] sm:$0xff]   ;;  %v1162_v13 = vld [vmem:[%s1381_s3 + $0x8] sm:$0xff]   ;;  %v1163_v14 = vld [vmem:[%s1381_s3] sm:$0xff]  }
  0x37   :  { %997 = vmatpush3.bf16.msra.mxu1 %v1130_v23  ;;  %v1164_v15 = vld [vmem:[%s1383_s5 + $0x38] sm:$0xff]   ;;  %v1165_v16 = vld [vmem:[%s1383_s5 + $0x30] sm:$0xff]   ;;  %v1166_v17 = vld [vmem:[%s1383_s5 + $0x28] sm:$0xff]  }
  0x38   :  { %998 = vmatprep.subr.bf16.mxu1 %v1133_v26  ;;  %v1167_v18 = vld [vmem:[%s1383_s5 + $0x20] sm:$0xff]   ;;  %v1168_v19 = vld [vmem:[%s1383_s5 + $0x18] sm:$0xff]  }
  0x39   :  { %977 = vmatpush3.bf16.msra.mxu0 %v1132_v25  ;;  %v895_v32 = vld [vmem:[%s1380_s2] ss:$0 sm:$0xff] }
  0x3a   :  { %978 = vmatprep.subr.bf16.mxu0 %v1135_v28  ;;  %v1171_v57 = vld [vmem:[%s1383_s5] sm:$0xff]  }
  0x3b   :  { %999 = vmatpush3.bf16.msra.mxu1 %v1134_v27 }
  0x3c   :  { %1000 = vmatprep.subr.bf16.mxu1 %v1137_v30 }
  0x3d   :  { %979 = vmatpush3.bf16.msra.mxu0 %v1136_v29 }
  0x3e   :  { %1008 = vmatprep.subr.bf16.mxu0 %v1139_v38 }
  0x3f   :  { %1001 = vmatpush3.bf16.msra.mxu1 %v1138_v34 }
  0x40   :  { %1050 = vmatprep.subr.bf16.mxu1 %v1244_v43  ;;  %513 = vmatmul.mubr.bf16.vlgmr.msra.gmra.mxu0 %v70_v37 }
  0x41   :  { %1009 = vmatpush3.bf16.msra.mxu0 %v1140_v42  ;;  %594 = vmatprep.mubr.bf16.mxu0 %v75_v61 }
  0x42   :  { %554 = vmatmul.mubr.bf16.vlgmr.msra.gmra.mxu1 %v72_v46  ;;  %1010 = vmatprep.subr.bf16.mxu0 %v1141_v47 }
  0x43   :  { %1052 = vmatprep.mubr.msk.bf16.mxu1 %vm1245_vm0, %v1244_v43  ;;  %1051 = vmatpush3.bf16.msra.mxu1 %v1155_v56  ;;  %v1170_v56 = vld [vmem:[%s1383_s5 + $0x8] sm:$0xff]  }
  0x44   :  { %1056 = vmatprep.subr.bf16.mxu1 %v1244_v43 }
  0x45   :  { %1011 = vmatpush3.bf16.msra.mxu0 %v1142_v48 }
  0x46   :  { %1012 = vmatprep.subr.bf16.mxu0 %v1143_v49 }
  0x49   :  { %1013 = vmatpush3.bf16.msra.mxu0 %v1144_v50 }
  0x4a   :  { %1014 = vmatprep.subr.bf16.mxu0 %v1145_v51  ;;  %1053 = vmatmul.mubr.msk.bf16.vlgmr.msra.gmra.mxu1 %vm476_vm1, %v76_v0 }
  0x4b   :  { %1072 = vmatprep.mubr.msk.bf16.mxu1 %vm1245_vm0, %v1244_v43  ;;  %1057 = vmatpush3.bf16.msra.mxu1 %v1156_v7 }
  0x4c   :  { %1058 = vmatprep.subr.bf16.mxu1 %v1244_v43 }
  0x4d   :  { %1015 = vmatpush3.bf16.msra.mxu0 %v1146_v52 }
  0x4e   :  { %1016 = vmatprep.subr.bf16.mxu0 %v1147_v53 }
  0x4f   :  { %1059 = vmatpush3.bf16.msra.mxu1 %v1157_v8 }
  0x50   :  { %1060 = vmatprep.subr.bf16.mxu1 %v1244_v43 }
  0x51   :  { %1017 = vmatpush3.bf16.msra.mxu0 %v1148_v54 }
  0x52   :  { %1018 = vmatprep.subr.bf16.mxu0 %v1149_v55  ;;  %v1169_v55 = vld [vmem:[%s1383_s5 + $0x10] sm:$0xff]  }
  0x53   :  { %1061 = vmatpush3.bf16.msra.mxu1 %v1158_v9 }
  0x54   :  { %1062 = vmatprep.subr.bf16.mxu1 %v1244_v43 }
  0x55   :  { %1019 = vmatpush3.bf16.msra.mxu0 %v1150_v58  ;;  %v946_v58 = vld [vmem:[%s1382_s4] ss:$0 sm:$0xff] }
  0x56   :  { %1020 = vmatprep.subr.bf16.mxu0 %v1151_v59 }
  0x57   :  { %1063 = vmatpush3.bf16.msra.mxu1 %v1159_v10 }
  0x58   :  { %1064 = vmatprep.subr.bf16.mxu1 %v1244_v43 }
  0x59   :  { %1021 = vmatpush3.bf16.msra.mxu0 %v1152_v1 }
  0x5a   :  { %1022 = vmatprep.subr.bf16.mxu0 %v1153_v2 }
  0x5b   :  { %1065 = vmatpush3.bf16.msra.mxu1 %v1160_v11 }
  0x5c   :  { %1066 = vmatprep.subr.bf16.mxu1 %v1244_v43 }
  0x5d   :  { %1023 = vmatpush3.bf16.msra.mxu0 %v1154_v3 }
  0x5e   :  { %1076 = vmatprep.subr.bf16.mxu0 %v1244_v43 }
  0x5f   :  { %1067 = vmatpush3.bf16.msra.mxu1 %v1161_v12 }
  0x60   :  { %595 = vmatmul.mubr.bf16.vlgmr.msra.gmra.mxu0 %v74_v6  ;;  %1068 = vmatprep.subr.bf16.mxu1 %v1244_v43 }
  0x61   :  { %1092 = vmatprep.mubr.msk.bf16.mxu0 %vm1245_vm0, %v1244_v43  ;;  %1077 = vmatpush3.bf16.msra.mxu0 %v1164_v15 }
  0x62   :  { %1078 = vmatprep.subr.bf16.mxu0 %v1244_v43 }
  0x63   :  { %1069 = vmatpush3.bf16.msra.mxu1 %v1162_v13 }
  0x64   :  { %1070 = vmatprep.subr.bf16.mxu1 %v1244_v43 }
  0x65   :  { %1079 = vmatpush3.bf16.msra.mxu0 %v1165_v16 }
  0x66   :  { %1080 = vmatprep.subr.bf16.mxu0 %v1244_v43 }
  0x67   :  { %1071 = vmatpush3.bf16.msra.mxu1 %v1163_v14 }
  0x69   :  { %1081 = vmatpush3.bf16.msra.mxu0 %v1166_v17 }
  0x6a   :  { %1082 = vmatprep.subr.bf16.mxu0 %v1244_v43 }
  0x6d   :  { %1083 = vmatpush3.bf16.msra.mxu0 %v1167_v18 }
  0x6e   :  { %1084 = vmatprep.subr.bf16.mxu0 %v1244_v43 }
  0x71   :  { %1085 = vmatpush3.bf16.msra.mxu0 %v1168_v19 }
  0x72   :  { %1086 = vmatprep.subr.bf16.mxu0 %v1244_v43 }
  0x75   :  { %1087 = vmatpush3.bf16.msra.mxu0 %v1169_v55 }
  0x76   :  { %1088 = vmatprep.subr.bf16.mxu0 %v1244_v43 }
  0x79   :  { %1089 = vmatpush3.bf16.msra.mxu0 %v1170_v56 }
  0x7a   :  { %1090 = vmatprep.subr.bf16.mxu0 %v1244_v43  ;;  %v955_v43 = vld [vmem:[%s1384_s6] ss:$0 sm:$0xff] }
  0x7d   :  { %1091 = vmatpush3.bf16.msra.mxu0 %v1171_v57 }
 0x100   :  { %v980_v23 = vpop.f32.mrf.mxu0 }
 0x102   :  { %v1002_v20 = vpop.f32.mrf.mxu1  ;;  %v981_v25 = vpop.f32.mrf.mxu0 }
 0x103   :  { %v982_v31 = vadd.f32 %v981_v25, %v980_v23 }
 0x104   :  { %v1003_v21 = vpop.f32.mrf.mxu1  ;;  %v983_v28 = vpop.f32.mrf.mxu0 }
 0x105   :  { %v515_v34 = vadd.f32 %v982_v31, %v895_v32  ;;  %v1004_v35 = vadd.f32 %v1003_v21, %v1002_v20 }
 0x106   :  { %v1005_v22 = vpop.f32.mrf.mxu1  ;;  %v984_v33 = vpop.f32.mrf.mxu0 }
 0x107   :  { %v985_v36 = vadd.f32 %v984_v33, %v983_v28  ;;  %v556_v39 = vadd.f32 %v1004_v35, %v515_v34 }
 0x108   :  { %v1006_v24 = vpop.f32.mrf.mxu1 }
 0x109   :  { %v518_v40 = vadd.f32 %v985_v36, %v895_v32  ;;  %v1007_v41 = vadd.f32 %v1006_v24, %v1005_v22 }
 0x10a   :  { %v637_v26 = vpop.f32.mrf.mxu1 }
 0x10b   :  { %v559_v47 = vadd.f32 %v1007_v41, %v518_v40 }
 0x10c   :  { %v1054_v27 = vpop.f32.mrf.mxu1 }
 0x10e   :  { %v640_v29 = vpop.f32.mrf.mxu1 }
 0x110   :  { %v1055_v30 = vpop.f32.mrf.mxu1 }
 0x120   :  { %v1024_v37 = vpop.f32.mrf.mxu0 }
 0x122   :  { %v1025_v38 = vpop.f32.mrf.mxu0 }
 0x123   :  { %v1026_v42 = vadd.f32 %v1025_v38, %v1024_v37 }
 0x124   :  { %v1027_v44 = vpop.f32.mrf.mxu0 }
 0x125   :  { %v597_v45 = vadd.f32 %v1026_v42, %v556_v39 }
 0x126   :  { %v1028_v46 = vpop.f32.mrf.mxu0 }
 0x127   :  { %v1029_v48 = vadd.f32 %v1028_v46, %v1027_v44  ;;  %v638_v49 = vadd.f32 %v637_v26, %v597_v45 }
 0x129   :  { %v600_v50 = vadd.f32 %v1029_v48, %v559_v47  ;;  %v644_v52 = vmax.f32 %v638_v49, 0.0 }
 0x12b   :  { %v641_v51 = vadd.f32 %v640_v29, %v600_v50 }
 0x12d   :  { %v645_v53 = vmax.f32 %v641_v51, 0.0 }
 0x12f   :  { %v646_v54 = vpack.c.bf16 %v645_v53, %v644_v52 }
 0x131   :  { %1073 = vmatmul.mubr.bf16.vlgmr.msra.gmra.mxu1 %v646_v54 }
 0x1f1   :  { %v752_v59 = vpop.f32.mrf.mxu1 }
 0x1f2   :  { %v753_v61 = vadd.f32 %v946_v58, %v752_v59 }
 0x1f3   :  { %v1074_v60 = vpop.f32.mrf.mxu1 }
 0x1f4   :  { %v759_v1 = vmax.f32 %v753_v61, 0.0 }
 0x1f5   :  { %v755_v62 = vpop.f32.mrf.mxu1 }
 0x1f6   :  { %v756_v63 = vadd.f32 %v946_v58, %v755_v62 }
 0x1f7   :  { %v1075_v0 = vpop.f32.mrf.mxu1 }
 0x1f8   :  { %v760_v2 = vmax.f32 %v756_v63, 0.0 }
 0x1fa   :  { %v761_v3 = vpack.c.bf16 %v760_v2, %v759_v1 }
 0x1fc   :  { %1093 = vmatmul.mubr.bf16.vlgmr.msra.gmra.mxu0 %v761_v3 }
 0x2bc   :  { %v867_v4 = vpop.f32.mrf.mxu0 }
 0x2bd   :  { %v868_v5 = vadd.f32 %v955_v43, %v867_v4 }
 0x2be   :  { %v1094_v6 = vpop.f32.mrf.mxu0 }
 0x2bf   :  { %875 = vst.msk [vmem:[#allocation7] sm:$0xff] %vm874_vm2, %v868_v5 }
 0x2c0   :  { %v870_v7 = vpop.f32.mrf.mxu0 }
 0x2c1   :  { %v871_v8 = vadd.f32 %v955_v43, %v870_v7 }
 0x2c2   :  { %v1095_v9 = vpop.f32.mrf.mxu0 }
 0x2c3   :  { %876 = vst.msk [vmem:[#allocation7 + $0x8] sm:$0xff] %vm874_vm2, %v871_v8 }
 0x2c4   :  { %881 = vsyncadd [#allocation4], 128  ;;  %s1246_s4 = smov [#allocation7]  }
 0x2c5   :  { %s882_s5 = sshll.u32 %s1246_s4, 4  ;;  %s883_s5 = int_to_ptr.vmem [resolvable:$true] %s882_s5 }
 0x2c6   :  { %s1212_s25 = scalar_lea.vmem %s883_s5, 128  ;;  %s1216_s26 = scalar_lea.vmem %s883_s5, 256 }
 0x2c7   :  { %p1213_p10 = scmp.ne.s32.totalorder %s883_s5, %s1212_s25  ;;  %p1217_p11 = scmp.lt.s32.totalorder %s883_s5, %s883_s5 }
 0x2c8   :  { %p1218_p12 = scmp.lt.s32.totalorder %s1216_s26, %s1212_s25 }
 0x2ca   :  { %p1219_p13 = por %p1218_p12, %p1217_p11 }
 0x2cc   :  { %p1220_p0 = pnand %p1219_p13, %p1213_p10 }
 0x2ce   :  { %1223 = shalt.err (!%p1220_p0)
}
 0x2cf   :  { %s1247_s6 = smov 128   ;;  %s1248_s27 = smov 8  }
 0x2d0   :  { %888 = dma.vmem_to_hbm [thread:$0]  %s883_s5, 128, %s1385_s7, [#allocation4], %s1247_s6, %s1247_s6, %s1248_s27  }
 0x2d1   :  { %1236 = dma.done.wait [#allocation4], 256  }
 0x2d2   :  { %1237 = vsyncadd [#allocation4], 4294967040 }
 0x2d3   :  { %892 = vsyncpa [#allocation3], 1 }
 0x2d4   :  { %893 = vsyncpa [#allocation6], 1 }
 0x2d5   :  { %894 = vsyncpa [#allocation4], 1 }

</bundles_post_ra>
